<compile_context>
chip_gen: v7x
topology: tpu7x:2x2x1
jax: 0.10.0
libtpu: 0.0.40
codegen_flags: <defaults>
</compile_context>

<pallas_src>
import functools

import jax
import jax.numpy as jnp
from jax import lax
from jax.experimental import pallas as pl
from jax.experimental.pallas import tpu as pltpu

LN_EPS = 1e-5

_LANE = 128
_PER_BUFFER_BUDGET = 2 * 1024 * 1024   # ~2 MiB per double-buffered block buffer
_MAX_REP_BYTES = 2 * 1024 * 1024       # cap for the lane-dense selection matrices
_VMEM_LIMIT_BYTES = 32 * 1024 * 1024   # safe on v5e/v6e/v7x


# ---------------------------------------------------------------------------
# Kernel bodies
# ---------------------------------------------------------------------------
def _se_block_kernel(x_ref, gamma_ref, beta_ref, w1_ref, w2_ref, o_ref):
    """Fused SE block for one (Bt, N, D) batch tile (lane-dense when D%128==0)."""
    n_tok = x_ref.shape[1]

    # Squeeze: per-batch token mean, accumulated in f32.  The f32 widen feeds
    # straight into the reduce and dies there — no f32 copy of the block stays
    # live across the body (the final scale re-reads x_ref at native width).
    y = jnp.sum(x_ref[...].astype(jnp.float32), axis=1) * (1.0 / n_tok)   # (Bt, D)

    # LayerNorm over the feature dim D.
    mu = jnp.mean(y, axis=-1, keepdims=True)
    var = jnp.mean((y - mu) * (y - mu), axis=-1, keepdims=True)
    yn = (y - mu) * lax.rsqrt(var + LN_EPS)
    yn = yn * gamma_ref[...].astype(jnp.float32) + beta_ref[...].astype(jnp.float32)

    # Excitation MLP on the MXU: D -> H (ReLU) -> D (Tanh), f32 accumulation.
    h = jnp.dot(yn, w1_ref[...].astype(jnp.float32),
                preferred_element_type=jnp.float32)
    h = jnp.maximum(h, 0.0)
    g = jnp.tanh(jnp.dot(h, w2_ref[...].astype(jnp.float32),
                         preferred_element_type=jnp.float32))             # (Bt, D)

    # Scale: cast only the tiny gate to the output dtype and multiply the
    # block at its native width (bf16 stays bf16 -> half the vst traffic).
    g = g.astype(o_ref.dtype)
    o_ref[...] = x_ref[...] * g[:, None, :]


def _se_block_flat_kernel(x_ref, rep_mean_ref, rep_bcast_ref, gamma_ref, beta_ref,
                          w1_ref, w2_ref, o_ref, *, n_tokens):
    """Lane-dense SE block: tokens folded into lanes, block = (Bt, N*D).

    rep_mean  (N*D, D): 0/1 matrix, x_flat @ rep_mean == token-sum per feature.
    rep_bcast (D, N*D): 0/1 matrix, gate  @ rep_bcast == gate tiled per token.
    Both matmuls run on the (otherwise idle) MXU with f32 accumulation, so no
    widened copy of the block is ever materialized and all loads/stores are
    unmasked full-lane accesses even when D is not a multiple of 128.
    """
    # Squeeze: token mean via MXU (f32 accumulation).
    y = jnp.dot(x_ref[...], rep_mean_ref[...],
                preferred_element_type=jnp.float32) * (1.0 / n_tokens)    # (Bt, D)

    # LayerNorm over D.
    mu = jnp.mean(y, axis=-1, keepdims=True)
    var = jnp.mean((y - mu) * (y - mu), axis=-1, keepdims=True)
    yn = (y - mu) * lax.rsqrt(var + LN_EPS)
    yn = yn * gamma_ref[...].astype(jnp.float32) + beta_ref[...].astype(jnp.float32)

    # Excitation MLP.
    h = jnp.maximum(jnp.dot(yn, w1_ref[...].astype(jnp.float32),
                            preferred_element_type=jnp.float32), 0.0)
    g = jnp.tanh(jnp.dot(h, w2_ref[...].astype(jnp.float32),
                         preferred_element_type=jnp.float32))             # (Bt, D)

    # Broadcast the gate across tokens with one more MXU matmul (native width)
    # and scale with a lane-dense store.
    g_flat = jnp.dot(g.astype(x_ref.dtype), rep_bcast_ref[...],
                     preferred_element_type=o_ref.dtype)                  # (Bt, N*D)
    o_ref[...] = x_ref[...] * g_flat


# ---------------------------------------------------------------------------
# Wrappers
# ---------------------------------------------------------------------------
def _pick_batch_tile(batch, row_bytes):
    """Largest batch tile with block buffers around the ~MiB HBM-roofline sweet spot."""
    bt = int(_PER_BUFFER_BUDGET // max(int(row_bytes), 1))
    return max(1, min(bt, batch))


def _compiler_params():
    return pltpu.CompilerParams(
        dimension_semantics=("parallel",),
        vmem_limit_bytes=_VMEM_LIMIT_BYTES,
    )


def _cost_estimate(B, N, D, H, itemsize, w_itemsize):
    flops = int(B * (2 * N * D + 10 * D + 2 * D * H + 2 * H * D))
    bytes_accessed = int(2 * B * N * D * itemsize
                         + (2 * D * H + 2 * D) * w_itemsize)
    return pl.CostEstimate(flops=flops,
                           transcendentals=int(B * (D + 1)),
                           bytes_accessed=bytes_accessed)


def _se_block_dense(x, gamma, beta, w1_t, w2_t, cost):
    B, N, D = x.shape
    H = w1_t.shape[1]
    bt = _pick_batch_tile(B, N * D * x.dtype.itemsize)
    grid = (pl.cdiv(B, bt),)   # ragged last block is fine: rows are independent,
                               # OOB writes are masked by Pallas.
    return pl.pallas_call(
        _se_block_kernel,
        out_shape=jax.ShapeDtypeStruct((B, N, D), x.dtype),
        grid_spec=pltpu.PrefetchScalarGridSpec(
            num_scalar_prefetch=0,
            grid=grid,
            in_specs=[
                pl.BlockSpec((bt, N, D), lambda b: (b, 0, 0)),   # x batch tile
                pl.BlockSpec((1, D), lambda b: (0, 0)),          # gamma (resident)
                pl.BlockSpec((1, D), lambda b: (0, 0)),          # beta  (resident)
                pl.BlockSpec((D, H), lambda b: (0, 0)),          # W_squeeze^T
                pl.BlockSpec((H, D), lambda b: (0, 0)),          # W_excite^T
            ],
            out_specs=pl.BlockSpec((bt, N, D), lambda b: (b, 0, 0)),
        ),
        compiler_params=_compiler_params(),
        cost_estimate=cost,
    )(x, gamma, beta, w1_t, w2_t)


def _se_block_flat(x, gamma, beta, w1_t, w2_t, cost, bt):
    B, N, D = x.shape
    H = w1_t.shape[1]
    L = N * D
    dtype = x.dtype

    # Lane-dense view (free row-major reshape) + 0/1 selection matrices in the
    # input dtype so the MXU reduction never widens the streamed block.
    x_flat = x.reshape(B, L)
    lane = jnp.arange(L, dtype=jnp.int32) % D
    feat = jnp.arange(D, dtype=jnp.int32)
    rep_mean = (lane[:, None] == feat[None, :]).astype(dtype)    # (L, D)
    rep_bcast = (feat[:, None] == lane[None, :]).astype(dtype)   # (D, L)

    kernel = functools.partial(_se_block_flat_kernel, n_tokens=N)

    out_flat = pl.pallas_call(
        kernel,
        out_shape=jax.ShapeDtypeStruct((B, L), dtype),
        grid_spec=pltpu.PrefetchScalarGridSpec(
            num_scalar_prefetch=0,
            grid=(pl.cdiv(B, bt),),
            in_specs=[
                pl.BlockSpec((bt, L), lambda b: (b, 0)),         # x batch tile
                pl.BlockSpec((L, D), lambda b: (0, 0)),          # rep_mean
                pl.BlockSpec((D, L), lambda b: (0, 0)),          # rep_bcast
                pl.BlockSpec((1, D), lambda b: (0, 0)),          # gamma
                pl.BlockSpec((1, D), lambda b: (0, 0)),          # beta
                pl.BlockSpec((D, H), lambda b: (0, 0)),          # W_squeeze^T
                pl.BlockSpec((H, D), lambda b: (0, 0)),          # W_excite^T
            ],
            out_specs=pl.BlockSpec((bt, L), lambda b: (b, 0)),
        ),
        compiler_params=_compiler_params(),
        cost_estimate=cost,
    )(x_flat, rep_mean, rep_bcast, gamma, beta, w1_t, w2_t)
    return out_flat.reshape(B, N, D)


def se_block(x, gamma, beta, w1_t, w2_t):
    """x: (B, N, D); gamma/beta: (1, D); w1_t: (D, H); w2_t: (H, D)."""
    B, N, D = x.shape
    H = w1_t.shape[1]
    assert gamma.shape == (1, D) and beta.shape == (1, D)
    assert w1_t.shape == (D, H) and w2_t.shape == (H, D)

    itemsize = x.dtype.itemsize
    cost = _cost_estimate(B, N, D, H, itemsize, w1_t.dtype.itemsize)

    # Lane-dense fallback only pays off when D is not already a multiple of 128
    # and the helper matrices are cheap.
    L = N * D
    rep_bytes = L * D * itemsize
    bt_flat = max(1, min(B, _PER_BUFFER_BUDGET // max(L * itemsize, 1)))
    if bt_flat < B:
        bt_flat -= bt_flat % 8          # 2nd-minor dim of a 2-D block: 8-aligned
    use_flat = (D % _LANE != 0
                and rep_bytes <= _MAX_REP_BYTES
                and (bt_flat == B or bt_flat >= 8))

    if use_flat:
        return _se_block_flat(x, gamma, beta, w1_t, w2_t, cost, bt_flat)
    # TODO(synk): if even a single (N, D) row overflows VMEM (huge N*D), split
    # into a reduce kernel + XLA gate + N-tiled scale kernel (v7x guidance).
    return _se_block_dense(x, gamma, beta, w1_t, w2_t, cost)


# ---------------------------------------------------------------------------
# Pure-JAX reference (mirrors the PyTorch forward)
# ---------------------------------------------------------------------------
def se_block_reference(x, gamma, beta, w1_t, w2_t):
    y = jnp.mean(x, axis=1, keepdims=True)                          # (B, 1, D)
    mu = jnp.mean(y, axis=-1, keepdims=True)
    var = jnp.mean((y - mu) ** 2, axis=-1, keepdims=True)
    yn = (y - mu) / jnp.sqrt(var + LN_EPS) * gamma[None] + beta[None]
    h = jnp.maximum(jnp.einsum("bod,dh->boh", yn, w1_t), 0.0)
    g = jnp.tanh(jnp.einsum("boh,hd->bod", h, w2_t))
    return g * x


# ---------------------------------------------------------------------------
# Demo / self-test
# ---------------------------------------------------------------------------
def _run_case(B, N, D, internal_reduce, dtype, atol, rtol, key):
    H = max(1, D // internal_reduce)
    kx, kg, kb, kw1, kw2 = jax.random.split(key, 5)

    x = jax.random.normal(kx, (B, N, D), jnp.float32).astype(dtype)
    gamma = (jnp.ones((1, D), jnp.float32)
             + 0.1 * jax.random.normal(kg, (1, D), jnp.float32)).astype(dtype)
    beta = (0.1 * jax.random.normal(kb, (1, D), jnp.float32)).astype(dtype)
    # PyTorch Linear weights are (out, in); the kernel consumes (in, out).
    w_squeeze = 0.2 * jax.random.normal(kw1, (H, D), jnp.float32)   # Squeeze: D->H
    w_excite = 0.2 * jax.random.normal(kw2, (D, H), jnp.float32)    # Excitation: H->D
    w1_t = w_squeeze.T.astype(dtype)
    w2_t = w_excite.T.astype(dtype)

    out = jax.block_until_ready(se_block(x, gamma, beta, w1_t, w2_t))
    assert out.shape == (B, N, D) and out.dtype == x.dtype

    f32 = jnp.float32
    ref = se_block_reference(x.astype(f32), gamma.astype(f32), beta.astype(f32),
                             w1_t.astype(f32), w2_t.astype(f32))
    assert jnp.allclose(out.astype(f32), ref, atol=atol, rtol=rtol), (
        f"mismatch vs reference for shape {(B, N, D)} dtype {dtype}")


if __name__ == "__main__":
    key = jax.random.PRNGKey(0)
    k1, k2, k3 = jax.random.split(key, 3)

    # 1) Lane-dense feature dim (D % 128 == 0): fused (Bt, N, D) path.
    _run_case(B=2, N=8, D=128, internal_reduce=16,
              dtype=jnp.float32, atol=1e-4, rtol=1e-4, key=k1)
    # 2) Original toy shape (D=32, not a multiple of 128): flattened lane-dense
    #    path with MXU selection-matrix reduce/broadcast.
    _run_case(B=2, N=8, D=32, internal_reduce=16,
              dtype=jnp.float32, atol=1e-3, rtol=1e-3, key=k2)
    # 3) bf16 input: gate is cast once to bf16, scale/store stay in bf16.
    _run_case(B=2, N=8, D=128, internal_reduce=16,
              dtype=jnp.bfloat16, atol=1e-1, rtol=1e-1, key=k3)

    print("KERNEL_OK")
</pallas_src>

<mosaic_0001>
module attributes {stable_mosaic.version = 11 : i64} {
  func.func @_se_block_kernel(%arg0: i32, %arg1: memref<2x8x128xf32, #tpu.memory_space<vmem>>, %arg2: memref<1x128xf32, #tpu.memory_space<vmem>>, %arg3: memref<1x128xf32, #tpu.memory_space<vmem>>, %arg4: memref<128x8xf32, #tpu.memory_space<vmem>>, %arg5: memref<8x128xf32, #tpu.memory_space<vmem>>, %arg6: memref<2x8x128xf32, #tpu.memory_space<vmem>>) attributes {dimension_semantics = [#tpu.dimension_semantics<parallel>], iteration_bounds = array<i64: 1>, scalar_prefetch = 0 : i64, scratch_operands = 0 : i64, tpu.core_type = #tpu.core_type<tc>, window_params = [{transform_indices = @transform_0, window_bounds = array<i64: 2, 8, 128>}, {pipeline_mode = #tpu.pipeline_mode<synchronous>, transform_indices = @transform_1, window_bounds = array<i64: 1, 128>}, {pipeline_mode = #tpu.pipeline_mode<synchronous>, transform_indices = @transform_2, window_bounds = array<i64: 1, 128>}, {pipeline_mode = #tpu.pipeline_mode<synchronous>, transform_indices = @transform_3, window_bounds = array<i64: 128, 8>}, {pipeline_mode = #tpu.pipeline_mode<synchronous>, transform_indices = @transform_4, window_bounds = array<i64: 8, 128>}, {transform_indices = @transform_5, window_bounds = array<i64: 2, 8, 128>}]} {
    %c0 = arith.constant 0 : index
    %c0_0 = arith.constant 0 : index
    %c0_1 = arith.constant 0 : index
    %0 = vector.load %arg1[%c0, %c0_0, %c0_1] : memref<2x8x128xf32, #tpu.memory_space<vmem>>, vector<2x8x128xf32>
    %cst = arith.constant dense<0.000000e+00> : vector<2x128xf32>
    %1 = vector.multi_reduction <add>, %0, %cst [1] : vector<2x8x128xf32> to vector<2x128xf32>
    %cst_2 = arith.constant 1.250000e-01 : f32
    %2 = vector.broadcast %cst_2 : f32 to vector<2x128xf32>
    %3 = arith.mulf %1, %2 : vector<2x128xf32>
    %cst_3 = arith.constant dense<0.000000e+00> : vector<2xf32>
    %4 = vector.multi_reduction <add>, %3, %cst_3 [1] : vector<2x128xf32> to vector<2xf32>
    %5 = vector.shape_cast %4 : vector<2xf32> to vector<2x1xf32>
    %cst_4 = arith.constant 1.280000e+02 : f32
    %6 = vector.broadcast %cst_4 : f32 to vector<2x1xf32>
    %7 = arith.divf %5, %6 : vector<2x1xf32>
    %8 = vector.broadcast %7 : vector<2x1xf32> to vector<2x128xf32>
    %9 = arith.subf %3, %8 : vector<2x128xf32>
    %10 = vector.broadcast %7 : vector<2x1xf32> to vector<2x128xf32>
    %11 = arith.subf %3, %10 : vector<2x128xf32>
    %12 = arith.mulf %9, %11 : vector<2x128xf32>
    %cst_5 = arith.constant dense<0.000000e+00> : vector<2xf32>
    %13 = vector.multi_reduction <add>, %12, %cst_5 [1] : vector<2x128xf32> to vector<2xf32>
    %14 = vector.shape_cast %13 : vector<2xf32> to vector<2x1xf32>
    %cst_6 = arith.constant 1.280000e+02 : f32
    %15 = vector.broadcast %cst_6 : f32 to vector<2x1xf32>
    %16 = arith.divf %14, %15 : vector<2x1xf32>
    %17 = vector.broadcast %7 : vector<2x1xf32> to vector<2x128xf32>
    %18 = arith.subf %3, %17 : vector<2x128xf32>
    %cst_7 = arith.constant 9.99999974E-6 : f32
    %19 = vector.broadcast %cst_7 : f32 to vector<2x1xf32>
    %20 = arith.addf %16, %19 : vector<2x1xf32>
    %21 = math.rsqrt %20 : vector<2x1xf32>
    %22 = vector.broadcast %21 : vector<2x1xf32> to vector<2x128xf32>
    %23 = arith.mulf %18, %22 : vector<2x128xf32>
    %c0_8 = arith.constant 0 : index
    %c0_9 = arith.constant 0 : index
    %24 = vector.load %arg2[%c0_8, %c0_9] : memref<1x128xf32, #tpu.memory_space<vmem>>, vector<1x128xf32>
    %25 = vector.broadcast %24 : vector<1x128xf32> to vector<2x128xf32>
    %26 = arith.mulf %23, %25 : vector<2x128xf32>
    %c0_10 = arith.constant 0 : index
    %c0_11 = arith.constant 0 : index
    %27 = vector.load %arg3[%c0_10, %c0_11] : memref<1x128xf32, #tpu.memory_space<vmem>>, vector<1x128xf32>
    %28 = vector.broadcast %27 : vector<1x128xf32> to vector<2x128xf32>
    %29 = arith.addf %26, %28 : vector<2x128xf32>
    %c0_12 = arith.constant 0 : index
    %c0_13 = arith.constant 0 : index
    %30 = vector.load %arg4[%c0_12, %c0_13] : memref<128x8xf32, #tpu.memory_space<vmem>>, vector<128x8xf32>
    %cst_14 = arith.constant dense<0.000000e+00> : vector<2x8xf32>
    %31 = tpu.matmul %29, %30, %cst_14 {dimension_numbers = #tpu.dot_dimension_numbers<[1], [0], [0], [1], [0, 0, 1, 1], [], []>} : vector<2x128xf32>, vector<128x8xf32>, vector<2x8xf32> -> vector<2x8xf32>
    %cst_15 = arith.constant 0.000000e+00 : f32
    %32 = vector.broadcast %cst_15 : f32 to vector<2x8xf32>
    %33 = arith.maximumf %31, %32 : vector<2x8xf32>
    %c0_16 = arith.constant 0 : index
    %c0_17 = arith.constant 0 : index
    %34 = vector.load %arg5[%c0_16, %c0_17] : memref<8x128xf32, #tpu.memory_space<vmem>>, vector<8x128xf32>
    %cst_18 = arith.constant dense<0.000000e+00> : vector<2x128xf32>
    %35 = tpu.matmul %33, %34, %cst_18 {dimension_numbers = #tpu.dot_dimension_numbers<[1], [0], [0], [1], [0, 0, 1, 1], [], []>} : vector<2x8xf32>, vector<8x128xf32>, vector<2x128xf32> -> vector<2x128xf32>
    %36 = math.tanh %35 : vector<2x128xf32>
    %c0_19 = arith.constant 0 : index
    %c0_20 = arith.constant 0 : index
    %c0_21 = arith.constant 0 : index
    %37 = vector.load %arg1[%c0_19, %c0_20, %c0_21] : memref<2x8x128xf32, #tpu.memory_space<vmem>>, vector<2x8x128xf32>
    %38 = vector.shape_cast %36 : vector<2x128xf32> to vector<2x1x128xf32>
    %39 = vector.broadcast %38 : vector<2x1x128xf32> to vector<2x8x128xf32>
    %40 = arith.mulf %37, %39 : vector<2x8x128xf32>
    %c0_22 = arith.constant 0 : index
    %c0_23 = arith.constant 0 : index
    %c0_24 = arith.constant 0 : index
    %41 = vector.load %arg6[%c0_22, %c0_23, %c0_24] : memref<2x8x128xf32, #tpu.memory_space<vmem>>, vector<2x8x128xf32>
    tpu.vector_store %arg6[%c0_22, %c0_23, %c0_24], %40 {strides = array<i32>} : memref<2x8x128xf32, #tpu.memory_space<vmem>>, vector<2x8x128xf32>,
    return
  }
  func.func @transform_0(%arg0: i32) -> (i32, i32, i32) {
    %c0_i32 = arith.constant 0 : i32
    %c0_i32_0 = arith.constant 0 : i32
    %c0_i32_1 = arith.constant 0 : i32
    return %arg0, %c0_i32, %c0_i32_0 : i32, i32, i32
  }
  func.func @transform_1(%arg0: i32) -> (i32, i32) {
    %c0_i32 = arith.constant 0 : i32
    %c0_i32_0 = arith.constant 0 : i32
    %c0_i32_1 = arith.constant 0 : i32
    return %c0_i32, %c0_i32_0 : i32, i32
  }
  func.func @transform_2(%arg0: i32) -> (i32, i32) {
    %c0_i32 = arith.constant 0 : i32
    %c0_i32_0 = arith.constant 0 : i32
    %c0_i32_1 = arith.constant 0 : i32
    return %c0_i32, %c0_i32_0 : i32, i32
  }
  func.func @transform_3(%arg0: i32) -> (i32, i32) {
    %c0_i32 = arith.constant 0 : i32
    %c0_i32_0 = arith.constant 0 : i32
    %c0_i32_1 = arith.constant 0 : i32
    return %c0_i32, %c0_i32_0 : i32, i32
  }
  func.func @transform_4(%arg0: i32) -> (i32, i32) {
    %c0_i32 = arith.constant 0 : i32
    %c0_i32_0 = arith.constant 0 : i32
    %c0_i32_1 = arith.constant 0 : i32
    return %c0_i32, %c0_i32_0 : i32, i32
  }
  func.func @transform_5(%arg0: i32) -> (i32, i32, i32) {
    %c0_i32 = arith.constant 0 : i32
    %c0_i32_0 = arith.constant 0 : i32
    %c0_i32_1 = arith.constant 0 : i32
    return %arg0, %c0_i32, %c0_i32_0 : i32, i32, i32
  }
}

</mosaic_0001>

<bundles_post_ra>
// kernel: tpu_custom_call.1
= control target key start
LH: loop header
LB: loop body
LE: loop exit
PB: predicated region body
PF: predicated region fallthrough
CT: control target
= control target key end

     0   :  { %s560_s0 = inlined_call_operand.vmem [shape: f32[2,8,128], index: 0, kind: input, shape index: {}]   ;;  %s561_s1 = inlined_call_operand.vmem [shape: f32[1,128], index: 1, kind: input, shape index: {}]   ;;  %s562_s2 = inlined_call_operand.vmem [shape: f32[1,128], index: 2, kind: input, shape index: {}]   ;;  %s563_s3 = inlined_call_operand.vmem [shape: f32[128,8], index: 3, kind: input, shape index: {}]   ;;  %s564_s4 = inlined_call_operand.vmem [shape: f32[8,128], index: 4, kind: input, shape index: {}]   ;;  %s565_s5 = inlined_call_operand.hbm [shape: f32[2,8,128], index: 5, kind: output, shape index: {}]  }
   0x1   :  { %v473_v0 = vld [vmem:[%s560_s0] sm:$0xff]  ;;  %v478_v1 = vld [vmem:[%s560_s0 + $0x8] sm:$0xff] }
   0x2   :  { %10 = vsyncpa [#allocation3], 0  ;;  %v23_v2 = vrot.slane %v473_v0, 4  ;;  %v29_v3 = vrot.slane %v478_v1, 4  ;;  %vm39_vm0 = vcmask 1041409   ;;  %vm42_vm1 = vcmask 1041408  }
   0x3   :  { %v91_v18 = vld [vmem:[%s563_s3] sm:$0xff]  ;;  %v92_v19 = vld [vmem:[%s563_s3 + $0x8] sm:$0xff]  ;;  %v93_v20 = vld [vmem:[%s563_s3 + $0x10] sm:$0xff]  ;;  %v433_v21 = vmov 0.0|0.0   ;;  %vm434_vm2 = vmmov 0   ;;  %v435_v52 = vmov 0.0  }
   0x4   :  { %v24_v4 = vadd.f32 %v23_v2, %v473_v0  ;;  %v30_v5 = vadd.f32 %v29_v3, %v478_v1  ;;  %374 = vmatprep.subr.bf16.mxu0 %v433_v21  ;;  %v375_v22 = vpack.c.bf16 %v92_v19, %v91_v18  ;;  %v94_v23 = vld [vmem:[%s563_s3 + $0x18] sm:$0xff]  ;;  %v95_v35 = vld [vmem:[%s563_s3 + $0x20] sm:$0xff]  ;;  %v96_v36 = vld [vmem:[%s563_s3 + $0x28] sm:$0xff]  ;;  %366 = vmatprep.mubr.msk.f32.mxu0 %vm434_vm2, %v435_v52  ;;  %vm184_vm3 = vcmask 64512  }
   0x5   :  { %v378_v24 = vpack.c.bf16 %v94_v23, %v93_v20  ;;  %v381_v37 = vpack.c.bf16 %v96_v36, %v95_v35  ;;  %v97_v38 = vld [vmem:[%s563_s3 + $0x30] sm:$0xff]  ;;  %v98_v39 = vld [vmem:[%s563_s3 + $0x38] sm:$0xff]  ;;  %v99_v41 = vld [vmem:[%s563_s3 + $0x40] sm:$0xff]  ;;  %369 = vmatprep.subr.mxu1 %v435_v52  ;;  %371 = vmatprep.mubr.msk.f32.mxu1 %vm434_vm2, %v435_v52 }
   0x6   :  { %v25_v6 = vrot.slane %v24_v4, 2  ;;  %v31_v7 = vrot.slane %v30_v5, 2  ;;  %376 = vmatpush3.bf16.msra.mxu0 %v375_v22  ;;  %v384_v40 = vpack.c.bf16 %v98_v39, %v97_v38  ;;  %v100_v42 = vld [vmem:[%s563_s3 + $0x48] sm:$0xff]  ;;  %v101_v44 = vld [vmem:[%s563_s3 + $0x50] sm:$0xff]  ;;  %v102_v45 = vld [vmem:[%s563_s3 + $0x58] sm:$0xff] }
   0x7   :  { %377 = vmatprep.subr.bf16.mxu0 %v433_v21  ;;  %v387_v43 = vpack.c.bf16 %v100_v42, %v99_v41  ;;  %v390_v46 = vpack.c.bf16 %v102_v45, %v101_v44  ;;  %v103_v47 = vld [vmem:[%s563_s3 + $0x60] sm:$0xff]  ;;  %v104_v48 = vld [vmem:[%s563_s3 + $0x68] sm:$0xff]  ;;  %v105_v50 = vld [vmem:[%s563_s3 + $0x70] sm:$0xff] }
   0x8   :  { %v26_v8 = vadd.f32 %v25_v6, %v24_v4  ;;  %v32_v9 = vadd.f32 %v31_v7, %v30_v5  ;;  %v393_v49 = vpack.c.bf16 %v104_v48, %v103_v47  ;;  %v106_v51 = vld [vmem:[%s563_s3 + $0x78] sm:$0xff]  ;;  %v312_v60 = vld [vmem:[%s561_s1] ss:$0 sm:$0xff]  ;;  %s437_s1 = smov [#allocation2]  }
   0x9   :  { %v396_v53 = vpack.c.bf16 %v106_v51, %v105_v50  ;;  %v313_v2 = vld [vmem:[%s562_s2] ss:$0 sm:$0xff]  ;;  %s301_s2 = sshll.u32 %s437_s1, 4  ;;  %s302_s2 = int_to_ptr.vmem [resolvable:$true] %s301_s2 }
   0xa   :  { %v27_v10 = vrot.slane %v26_v8, 1  ;;  %v33_v11 = vrot.slane %v32_v9, 1  ;;  %379 = vmatpush3.bf16.msra.mxu0 %v378_v24  ;;  %v183_v7 = vld [vmem:[%s564_s4] sm:$0xff]  ;;  %s409_s4 = scalar_lea.vmem %s302_s2, 256  ;;  %p414_p1 = scmp.lt.s32.totalorder %s302_s2, %s302_s2 }
   0xb   :  { %380 = vmatprep.subr.bf16.mxu0 %v433_v21  ;;  %370 = vmatpush3.msra.mxu1 %v183_v7  ;;  %p410_p0 = scmp.ne.s32.totalorder %s302_s2, %s409_s4  ;;  %p415_p2 = scmp.lt.s32.totalorder %s409_s4, %s409_s4 }
   0xc   :  { %v28_v12 = vadd.f32 %v27_v10, %v26_v8  ;;  %v34_v13 = vadd.f32 %v33_v11, %v32_v9 }
   0xd   :  { %p416_p3 = por %p415_p2, %p414_p1 }
   0xe   :  { %v35_v14 = vmul.f32 0.125, %v28_v12  ;;  %v36_v15 = vmul.f32 0.125, %v34_v13  ;;  %382 = vmatpush3.bf16.msra.mxu0 %v381_v37  ;;  %v436_v12 = vmov 1966171168  }
   0xf   :  { %383 = vmatprep.subr.bf16.mxu0 %v433_v21  ;;  %v261_v13 = vunpack.c.l.s4 %v436_v12  ;;  %p417_p4 = pnand %p416_p3, %p410_p0 }
  0x10   :  { %v40_v16 = vsel %vm39_vm0, %v36_v15, %v35_v14 }
  0x11   :  { %v43_v17 = vsel %vm42_vm1, %v40_v16, 0.0  ;;  %v262_v16 = vunpack.c.0.s8 %v261_v13 }
  0x12   :  { %44 = vadd.xlane.f32.xlu0 %v43_v17  ;;  %385 = vmatpush3.bf16.msra.mxu0 %v384_v40 }
  0x13   :  { %386 = vmatprep.subr.bf16.mxu0 %v433_v21 }
  0x16   :  { %388 = vmatpush3.bf16.msra.mxu0 %v387_v43 }
  0x17   :  { %389 = vmatprep.subr.bf16.mxu0 %v433_v21 }
  0x1a   :  { %391 = vmatpush3.bf16.msra.mxu0 %v390_v46 }
  0x1b   :  { %392 = vmatprep.subr.bf16.mxu0 %v433_v21 }
  0x1e   :  { %394 = vmatpush3.bf16.msra.mxu0 %v393_v49 }
  0x1f   :  { %395 = vmatprep.subr.bf16.mxu0 %v433_v21 }
  0x22   :  { %397 = vmatpush3.bf16.msra.mxu0 %v396_v53 }
  0x9f   :  { %v45_v25 = vpop.xlane.xlu0 %44 }
  0xa0   :  { %v47_v26 = vmul.f32 0.0078125, %v45_v25 }
  0xa2   :  { %v49_v27 = vrot.slane %v47_v26, 1  ;;  %v52_v28 = vsub.f32 %v35_v14, %v47_v26  ;;  %v263_v14 = vlaneseq }
  0xa4   :  { %v53_v29 = vsub.f32 %v36_v15, %v49_v27  ;;  %v54_v31 = vmul.f32 %v52_v28, %v52_v28  ;;  %v264_v17 = vshrl.u32 %v263_v14, 7 }
  0xa6   :  { %v55_v30 = vmul.f32 %v53_v29, %v53_v29  ;;  %v265_v18 = vsub.s32 %v262_v16, %v264_v17  ;;  %v284_v21 = vsub.s32 0, %v264_v17 }
  0xa8   :  { %v58_v32 = vrot.slane %v55_v30, 7 }
  0xaa   :  { %v59_v33 = vsel %vm39_vm0, %v58_v32, %v54_v31 }
  0xab   :  { %v61_v34 = vsel %vm42_vm1, %v59_v33, 0.0 }
  0xac   :  { %62 = vadd.xlane.f32.xlu0 %v61_v34 }
 0x139   :  { %v63_v54 = vpop.xlane.xlu0 %62 }
 0x13a   :  { %v64_v55 = vmul.f32 0.0078125, %v63_v54 }
 0x13c   :  { %v65_v56 = vadd.f32 1e-05, %v64_v55 }
 0x13e   :  { %405 = vrsqrt.f32 %v65_v56 }
 0x148   :  { %v406_v57 = vpop.eup %405 }
 0x149   :  { %v68_v58 = vrot.slane %v406_v57, 1  ;;  %v71_v59 = vmul.f32 %v406_v57, %v52_v28 }
 0x14b   :  { %v72_v61 = vmul.f32 %v68_v58, %v53_v29  ;;  %v80_v62 = vmul.f32 %v312_v60, %v71_v59 }
 0x14d   :  { %v81_v63 = vmul.f32 %v312_v60, %v72_v61  ;;  %v89_v4 = vadd.f32 %v313_v2, %v80_v62 }
 0x14f   :  { %v90_v3 = vadd.f32 %v313_v2, %v81_v63 }
 0x151   :  { %v109_v5 = vrot.slane %v90_v3, 7 }
 0x153   :  { %v110_v6 = vsel %vm39_vm0, %v109_v5, %v89_v4 }
 0x154   :  { %367 = vmatmul.mubr.f32.vlgmr.msra.gmra.mrb[0].mxu0 %v110_v6 }
 0x227   :  { %v178_v8 = vpop.f32.mrb[0].mxu0 }
 0x228   :  { %v182_v9 = vmax.f32 %v178_v8, 0.0  ;;  %v368_v10 = vpop.f32.mrb[1].mxu0 }
 0x22a   :  { %372 = vmatmul.mubr.msk.f32.vlgmr.msra.gmra.mrb[0].mxu1 %vm184_vm3, %v182_v9 }
 0x2fd   :  { %v254_v11 = vpop.f32.mrb[0].mxu1 }
 0x2fe   :  { %407 = vtanh.f32 %v254_v11  ;;  %v373_v15 = vpop.f32.mrb[1].mxu1 }
 0x308   :  { %v408_v19 = vpop.eup %407 }
 0x309   :  { %v266_v20 = vrot.slane %v408_v19, %v265_v18 }
 0x30b   :  { %v267_v22 = vcombine.high %v266_v20, %v266_v20  ;;  %v274_v23 = vrot.slane %v266_v20, %v265_v18 }
 0x30d   :  { %v281_v24 = vrot.slane %v267_v22, %v265_v18  ;;  %v285_v25 = vrot.slane %v274_v23, %v284_v21 }
 0x30f   :  { %v289_v26 = vrot.slane %v281_v24, %v284_v21  ;;  %v292_v27 = vmul.f32 %v285_v25, %v473_v0 }
 0x311   :  { %v293_v28 = vmul.f32 %v289_v26, %v478_v1  ;;  %294 = vst [vmem:[#allocation2] sm:$0xff] %v292_v27 }
 0x313   :  { %295 = vst [vmem:[#allocation2 + $0x8] sm:$0xff] %v293_v28 }
 0x314   :  { %420 = shalt.err (!%p417_p4)
}
 0x315   :  { %s421_s9 = scalar_lea.hbm %s565_s5, 256 }
 0x316   :  { %p422_p5 = scmp.ne.s32.totalorder %s565_s5, %s421_s9  ;;  %p425_p6 = scmp.lt.u32.totalorder %s421_s9, %s565_s5 }
 0x318   :  { %p427_p7 = pnand %p425_p6, %p422_p5 }
 0x31a   :  { %430 = shalt.err (!%p427_p7)
}
 0x31b   :  { %s438_s14 = smov 128   ;;  %s439_s15 = smov 8  }
 0x31c   :  { %307 = dma.vmem_to_hbm [thread:$0]  %s302_s2, 256, %s565_s5, [#allocation3], %s438_s14, %s438_s14, %s439_s15  }
 0x31d   :  { %431 = dma.done.wait [#allocation3], 256  }
 0x31e   :  { %432 = vsyncadd [#allocation3], 4294967040 }
 0x31f   :  { %311 = vsyncpa [#allocation3], 1 }

</bundles_post_ra>
